<compile_context>
chip_gen: v7x
topology: tpu7x:2x2x1
jax: 0.10.0
libtpu: 0.0.40
codegen_flags: <defaults>
</compile_context>

<pallas_src>
import functools

import jax
import jax.numpy as jnp
from jax.experimental import pallas as pl
from jax.experimental.pallas import tpu as pltpu

HIDDEN = 512               # fixed by the module definition (nn.Linear(input_dim, 512))
_K_TILE_THRESHOLD = 4096   # switch to the K-tiled pipeline above this input_dim
_BLOCK_K = 1024            # reduction tile over input_dim (K-tiled path only)


def _round_up(v: int, m: int) -> int:
    return ((v + m - 1) // m) * m


def _vmem_limit_bytes() -> int:
    """Generation-aware VMEM cap: ~48 MiB on v7x (64 MiB physical),
    up to 96 MiB on v5e/v6e (128 MiB physical)."""
    try:
        cap = int(pltpu.get_tpu_info().vmem_capacity_bytes)
    except Exception:
        cap = 64 * 1024 * 1024  # conservative fallback (v7x-sized)
    return int(min(max(cap - 16 * 1024 * 1024, 32 * 1024 * 1024),
                   96 * 1024 * 1024))


_VMEM_LIMIT = _vmem_limit_bytes()


def adapter_kernel(x_ref, w1_ref, b1_ref, w2_ref, b2_ref, o_ref):
    # Cast x to bf16 in-kernel (VPU work, hidden under the MXU); both matmuls
    # run bf16 operands with f32 accumulation.
    h = jnp.dot(x_ref[...].astype(jnp.bfloat16), w1_ref[...],
                preferred_element_type=jnp.float32)
    # Bias + ReLU in f32 on the VPU.
    h = jnp.maximum(h + b1_ref[...], 0.0)
    # Downcast once for the second bf16 matmul; accumulate in f32.
    y = jnp.dot(h.astype(jnp.bfloat16), w2_ref[...],
                preferred_element_type=jnp.float32)
    o_ref[...] = (y + b2_ref[...]).astype(o_ref.dtype)


def adapter_kernel_ktiled(x_ref, w1_ref, b1_ref, w2_ref, b2_ref, o_ref, h_acc):
    # Grid = (row tiles, K tiles); K (input_dim) is the reduction axis of the
    # first matmul.  The hidden pre-activation accumulates in an f32 scratch.
    k = pl.program_id(1)

    @pl.when(k == 0)
    def _():
        h_acc[...] = jnp.zeros_like(h_acc)

    h_acc[...] += jnp.dot(x_ref[...].astype(jnp.bfloat16), w1_ref[...],
                          preferred_element_type=jnp.float32)

    @pl.when(k == pl.num_programs(1) - 1)
    def _():
        h = jnp.maximum(h_acc[...] + b1_ref[...], 0.0)
        y = jnp.dot(h.astype(jnp.bfloat16), w2_ref[...],
                    preferred_element_type=jnp.float32)
        o_ref[...] = (y + b2_ref[...]).astype(o_ref.dtype)


@functools.partial(jax.jit, static_argnames=("block_m",))
def adapter_forward(x, w1, b1, w2, b2, *, block_m=512):
    """Fused MLP adapter: relu(x @ w1 + b1) @ w2 + b2."""
    m, d_in = x.shape
    d_out = w2.shape[1]

    # --- Tile / padding choices (all static) ------------------------------
    # Lane-dense output: pad output feature dim up to a multiple of 128.
    d_out_p = max(128, _round_up(d_out, 128))
    # Row tile: multiple of 16 (bf16 sublane packing), capped at the batch.
    blk_m = max(16, _round_up(min(block_m, _round_up(m, 16)), 16))
    # Megacore (v7x): give batches >= 512 at least two grid steps so the
    # "parallel" axis actually shards across both TensorCores.
    if m >= 512 and _round_up(m, blk_m) <= blk_m:
        blk_m = max(256, _round_up(-(-m // 2), 16))
    m_p = _round_up(m, blk_m)

    use_k_tiling = d_in > _K_TILE_THRESHOLD

    # --- Operand prep ------------------------------------------------------
    # x stays in the caller's dtype (cast to bf16 happens in-kernel); rows are
    # only padded when the batch is ragged.
    x_p = x if m_p == m else jnp.pad(x, ((0, m_p - m), (0, 0)))
    w1_b = w1.astype(jnp.bfloat16)
    w2_b = jnp.pad(w2.astype(jnp.bfloat16), ((0, 0), (0, d_out_p - d_out)))
    b1_f = b1.astype(jnp.float32).reshape(1, HIDDEN)
    b2_f = jnp.pad(b2.astype(jnp.float32).reshape(1, d_out),
                   ((0, 0), (0, d_out_p - d_out)))

    # Constant-index_map operands: single-buffer (halves their VMEM footprint).
    resident = pl.Buffered(1)

    if not use_k_tiling:
        grid = (m_p // blk_m,)
        in_specs = [
            pl.BlockSpec((blk_m, d_in), lambda i: (i, 0)),
            pl.BlockSpec((d_in, HIDDEN), lambda i: (0, 0), pipeline_mode=resident),
            pl.BlockSpec((1, HIDDEN), lambda i: (0, 0), pipeline_mode=resident),
            pl.BlockSpec((HIDDEN, d_out_p), lambda i: (0, 0), pipeline_mode=resident),
            pl.BlockSpec((1, d_out_p), lambda i: (0, 0), pipeline_mode=resident),
        ]
        out_specs = pl.BlockSpec((blk_m, d_out_p), lambda i: (i, 0))
        kernel = adapter_kernel
        scratch_shapes = ()
        dim_sem = ("parallel",)
    else:
        # K-tiled path for very large input_dim (bounds VMEM on v7x).
        blk_k = _BLOCK_K
        d_in_p = _round_up(d_in, blk_k)
        if d_in_p != d_in:
            x_p = jnp.pad(x_p, ((0, 0), (0, d_in_p - d_in)))
            w1_b = jnp.pad(w1_b, ((0, d_in_p - d_in), (0, 0)))
        grid = (m_p // blk_m, d_in_p // blk_k)
        in_specs = [
            pl.BlockSpec((blk_m, blk_k), lambda i, k: (i, k)),
            pl.BlockSpec((blk_k, HIDDEN), lambda i, k: (k, 0)),
            pl.BlockSpec((1, HIDDEN), lambda i, k: (0, 0), pipeline_mode=resident),
            pl.BlockSpec((HIDDEN, d_out_p), lambda i, k: (0, 0), pipeline_mode=resident),
            pl.BlockSpec((1, d_out_p), lambda i, k: (0, 0), pipeline_mode=resident),
        ]
        out_specs = pl.BlockSpec((blk_m, d_out_p), lambda i, k: (i, 0))
        kernel = adapter_kernel_ktiled
        scratch_shapes = (pltpu.VMEM((blk_m, HIDDEN), jnp.float32),)
        dim_sem = ("parallel", "arbitrary")

    # Advisory cost estimate on the unpadded problem.
    out_itemsize = jnp.dtype(x.dtype).itemsize
    flops = 2 * m * HIDDEN * (d_in + d_out)
    bytes_accessed = (m * d_in * out_itemsize
                      + (d_in * HIDDEN + HIDDEN * d_out) * 2
                      + (HIDDEN + d_out) * 4
                      + m * d_out * out_itemsize)

    out = pl.pallas_call(
        kernel,
        out_shape=jax.ShapeDtypeStruct((m_p, d_out_p), x.dtype),
        grid_spec=pltpu.PrefetchScalarGridSpec(
            num_scalar_prefetch=0,
            grid=grid,
            in_specs=in_specs,
            out_specs=out_specs,
            scratch_shapes=scratch_shapes,
        ),
        compiler_params=pltpu.CompilerParams(
            dimension_semantics=dim_sem,
            vmem_limit_bytes=_VMEM_LIMIT,
        ),
        cost_estimate=pl.CostEstimate(
            flops=flops, transcendentals=0, bytes_accessed=bytes_accessed),
    )(x_p, w1_b, b1_f, w2_b, b2_f)

    # Strip batch / output-lane padding only when it was actually added; the
    # kernel already wrote in the caller's dtype, so no astype post-pass.
    if m_p == m and d_out_p == d_out:
        return out
    return out[:m, :d_out]


def init_adapter_params(key, input_dim, output_dim, dtype=jnp.float32):
    """Deterministic synthetic init matching PyTorch Linear shapes
    (stored transposed: (in, out))."""
    k1, k2, k3, k4 = jax.random.split(key, 4)
    # PyTorch default init: U(-1/sqrt(fan_in), 1/sqrt(fan_in))
    lim1 = 1.0 / jnp.sqrt(jnp.float32(input_dim))
    lim2 = 1.0 / jnp.sqrt(jnp.float32(HIDDEN))
    w1 = jax.random.uniform(k1, (input_dim, HIDDEN), dtype, -lim1, lim1)
    b1 = jax.random.uniform(k2, (1, HIDDEN), dtype, -lim1, lim1)
    w2 = jax.random.uniform(k3, (HIDDEN, output_dim), dtype, -lim2, lim2)
    b2 = jax.random.uniform(k4, (1, output_dim), dtype, -lim2, lim2)
    return w1, b1, w2, b2


if __name__ == "__main__":
    # Small shapes consistent with the module: batch=8, input_dim=32, output_dim=64
    batch, input_dim, output_dim = 8, 32, 64

    key = jax.random.PRNGKey(0)
    kx, kp = jax.random.split(key)
    x = jax.random.normal(kx, (batch, input_dim), dtype=jnp.float32)
    w1, b1, w2, b2 = init_adapter_params(kp, input_dim, output_dim)

    out = adapter_forward(x, w1, b1, w2, b2)
    out = jax.block_until_ready(out)
    assert out.shape == (batch, output_dim)
    assert out.dtype == x.dtype

    # Reference 1: same bf16-operand / f32-accumulation math in plain JAX.
    xb, w1b, w2b = (a.astype(jnp.bfloat16) for a in (x, w1, w2))
    h_ref = jnp.maximum(
        jnp.dot(xb, w1b, preferred_element_type=jnp.float32) + b1, 0.0)
    ref_bf16 = jnp.dot(h_ref.astype(jnp.bfloat16), w2b,
                       preferred_element_type=jnp.float32) + b2
    assert jnp.allclose(out, ref_bf16, atol=1e-2, rtol=1e-2)

    # Reference 2 (loose): full-f32 PyTorch-equivalent forward.
    ref_f32 = jnp.maximum(x @ w1 + b1, 0.0) @ w2 + b2
    assert jnp.allclose(out, ref_f32, atol=5e-2, rtol=5e-2)

    print("KERNEL_OK")
</pallas_src>

<mosaic_0001>
module attributes {stable_mosaic.version = 11 : i64} {
  func.func @adapter_kernel(%arg0: i32, %arg1: memref<16x32xf32, #tpu.memory_space<vmem>>, %arg2: memref<32x512xbf16, #tpu.memory_space<vmem>>, %arg3: memref<1x512xf32, #tpu.memory_space<vmem>>, %arg4: memref<512x128xbf16, #tpu.memory_space<vmem>>, %arg5: memref<1x128xf32, #tpu.memory_space<vmem>>, %arg6: memref<16x128xf32, #tpu.memory_space<vmem>>) attributes {dimension_semantics = [#tpu.dimension_semantics<parallel>], iteration_bounds = array<i64: 1>, scalar_prefetch = 0 : i64, scratch_operands = 0 : i64, tpu.core_type = #tpu.core_type<tc>, window_params = [{transform_indices = @transform_0, window_bounds = array<i64: 16, 32>}, {pipeline_mode = #tpu.pipeline_mode<synchronous>, transform_indices = @transform_1, window_bounds = array<i64: 32, 512>}, {pipeline_mode = #tpu.pipeline_mode<synchronous>, transform_indices = @transform_2, window_bounds = array<i64: 1, 512>}, {pipeline_mode = #tpu.pipeline_mode<synchronous>, transform_indices = @transform_3, window_bounds = array<i64: 512, 128>}, {pipeline_mode = #tpu.pipeline_mode<synchronous>, transform_indices = @transform_4, window_bounds = array<i64: 1, 128>}, {transform_indices = @transform_5, window_bounds = array<i64: 16, 128>}]} {
    %c0 = arith.constant 0 : index
    %c0_0 = arith.constant 0 : index
    %0 = vector.load %arg1[%c0, %c0_0] : memref<16x32xf32, #tpu.memory_space<vmem>>, vector<16x32xf32>
    %1 = arith.truncf %0 : vector<16x32xf32> to vector<16x32xbf16>
    %c0_1 = arith.constant 0 : index
    %c0_2 = arith.constant 0 : index
    %2 = vector.load %arg2[%c0_1, %c0_2] : memref<32x512xbf16, #tpu.memory_space<vmem>>, vector<32x512xbf16>
    %cst = arith.constant dense<0.000000e+00> : vector<16x512xf32>
    %3 = tpu.matmul %1, %2, %cst {dimension_numbers = #tpu.dot_dimension_numbers<[1], [0], [0], [1], [0, 0, 1, 1], [], []>} : vector<16x32xbf16>, vector<32x512xbf16>, vector<16x512xf32> -> vector<16x512xf32>
    %c0_3 = arith.constant 0 : index
    %c0_4 = arith.constant 0 : index
    %4 = vector.load %arg3[%c0_3, %c0_4] : memref<1x512xf32, #tpu.memory_space<vmem>>, vector<1x512xf32>
    %5 = vector.broadcast %4 : vector<1x512xf32> to vector<16x512xf32>
    %6 = arith.addf %3, %5 : vector<16x512xf32>
    %cst_5 = arith.constant 0.000000e+00 : f32
    %7 = vector.broadcast %cst_5 : f32 to vector<16x512xf32>
    %8 = arith.maximumf %6, %7 : vector<16x512xf32>
    %9 = arith.truncf %8 : vector<16x512xf32> to vector<16x512xbf16>
    %c0_6 = arith.constant 0 : index
    %c0_7 = arith.constant 0 : index
    %10 = vector.load %arg4[%c0_6, %c0_7] : memref<512x128xbf16, #tpu.memory_space<vmem>>, vector<512x128xbf16>
    %cst_8 = arith.constant dense<0.000000e+00> : vector<16x128xf32>
    %11 = tpu.matmul %9, %10, %cst_8 {dimension_numbers = #tpu.dot_dimension_numbers<[1], [0], [0], [1], [0, 0, 1, 1], [], []>} : vector<16x512xbf16>, vector<512x128xbf16>, vector<16x128xf32> -> vector<16x128xf32>
    %c0_9 = arith.constant 0 : index
    %c0_10 = arith.constant 0 : index
    %12 = vector.load %arg5[%c0_9, %c0_10] : memref<1x128xf32, #tpu.memory_space<vmem>>, vector<1x128xf32>
    %13 = vector.broadcast %12 : vector<1x128xf32> to vector<16x128xf32>
    %14 = arith.addf %11, %13 : vector<16x128xf32>
    %c0_11 = arith.constant 0 : index
    %c0_12 = arith.constant 0 : index
    %15 = vector.load %arg6[%c0_11, %c0_12] : memref<16x128xf32, #tpu.memory_space<vmem>>, vector<16x128xf32>
    tpu.vector_store %arg6[%c0_11, %c0_12], %14 {strides = array<i32>} : memref<16x128xf32, #tpu.memory_space<vmem>>, vector<16x128xf32>,
    return
  }
  func.func @transform_0(%arg0: i32) -> (i32, i32) {
    %c0_i32 = arith.constant 0 : i32
    %c0_i32_0 = arith.constant 0 : i32
    return %arg0, %c0_i32 : i32, i32
  }
  func.func @transform_1(%arg0: i32) -> (i32, i32) {
    %c0_i32 = arith.constant 0 : i32
    %c0_i32_0 = arith.constant 0 : i32
    %c0_i32_1 = arith.constant 0 : i32
    return %c0_i32, %c0_i32_0 : i32, i32
  }
  func.func @transform_2(%arg0: i32) -> (i32, i32) {
    %c0_i32 = arith.constant 0 : i32
    %c0_i32_0 = arith.constant 0 : i32
    %c0_i32_1 = arith.constant 0 : i32
    return %c0_i32, %c0_i32_0 : i32, i32
  }
  func.func @transform_3(%arg0: i32) -> (i32, i32) {
    %c0_i32 = arith.constant 0 : i32
    %c0_i32_0 = arith.constant 0 : i32
    %c0_i32_1 = arith.constant 0 : i32
    return %c0_i32, %c0_i32_0 : i32, i32
  }
  func.func @transform_4(%arg0: i32) -> (i32, i32) {
    %c0_i32 = arith.constant 0 : i32
    %c0_i32_0 = arith.constant 0 : i32
    %c0_i32_1 = arith.constant 0 : i32
    return %c0_i32, %c0_i32_0 : i32, i32
  }
  func.func @transform_5(%arg0: i32) -> (i32, i32) {
    %c0_i32 = arith.constant 0 : i32
    %c0_i32_0 = arith.constant 0 : i32
    return %arg0, %c0_i32 : i32, i32
  }
}

</mosaic_0001>

<bundles_post_ra>
// kernel: adapter_forward.1
= control target key start
LH: loop header
LB: loop body
LE: loop exit
PB: predicated region body
PF: predicated region fallthrough
CT: control target
= control target key end

     0   :  { %v679_v1 = vmov 0   ;;  %vm94_vm0 = vcmask 261120   ;;  %v34_v44 = vlaneseq  ;;  %s848_s1 = inlined_call_operand.vmem [shape: bf16[32,512], index: 1, kind: input, shape index: {}]   ;;  %s849_s0 = inlined_call_operand.vmem [shape: f32[16,32], index: 0, kind: input, shape index: {}]   ;;  %s850_s3 = inlined_call_operand.vmem [shape: bf16[512,128], index: 3, kind: input, shape index: {}]   ;;  %s851_s2 = inlined_call_operand.vmem [shape: f32[1,512], index: 2, kind: input, shape index: {}]   ;;  %s852_s4 = inlined_call_operand.vmem [shape: f32[1,128], index: 4, kind: input, shape index: {}]   ;;  %s853_s5 = inlined_call_operand.vmem [shape: f32[16,128], index: 5, kind: output, shape index: {}]  }
   0x1   :  { %v635_v0 = vld [vmem:[%s848_s1 + $0x4] ss:$16 sps:$4 sm:$0xff]   ;;  %130 = vmatprep.mubr.bf16.mxu0 %v679_v1  ;;  %173 = vmatprep.mubr.bf16.mxu1 %v679_v1  ;;  %v637_v2 = vld [vmem:[%s848_s1 + $0xc] ss:$16 sps:$4 sm:$0xff]   ;;  %v639_v3 = vld [vmem:[%s848_s1] ss:$16 sps:$4 sm:$0xff]  }
   0x2   :  { %98 = vmatprep.subr.bf16.mxu0 %v635_v0  ;;  %v640_v4 = vld [vmem:[%s848_s1 + $0x8] ss:$16 sps:$4 sm:$0xff]   ;;  %141 = vmatprep.subr.bf16.mxu1 %v637_v2  ;;  %v641_v5 = vld [vmem:[%s848_s1 + $0x24] ss:$16 sps:$4 sm:$0xff]   ;;  %v643_v6 = vld [vmem:[%s848_s1 + $0x2c] ss:$16 sps:$4 sm:$0xff]  }
   0x3   :  { %99 = vmatpush1.bf16.msra.mxu0 %v639_v3  ;;  %142 = vmatpush1.bf16.msra.mxu1 %v640_v4  ;;  %v645_v7 = vld [vmem:[%s848_s1 + $0x20] ss:$16 sps:$4 sm:$0xff]   ;;  %v646_v8 = vld [vmem:[%s848_s1 + $0x28] ss:$16 sps:$4 sm:$0xff]   ;;  %v35_v45 = vshrl.u32 %v34_v44, 7 }
   0x4   :  { %100 = vmatprep.subr.bf16.mxu0 %v641_v5  ;;  %v21_v9 = vld [vmem:[%s849_s0] sm:$0xff]  ;;  %v22_v10 = vld [vmem:[%s849_s0 + $0x8] sm:$0xff]  ;;  %143 = vmatprep.subr.bf16.mxu1 %v643_v6  ;;  %v655_v20 = vld [vmem:[%s850_s3 + $0x50] sm:$0xff]  }
   0x5   :  { %v647_v11 = vld [vmem:[%s850_s3 + $0x40] sm:$0xff]   ;;  %v23_v12 = vpack.c.bf16 %v22_v10, %v21_v9  ;;  %v651_v16 = vld [vmem:[%s850_s3 + $0x48] sm:$0xff]   ;;  %v656_v21 = vld [vmem:[%s850_s3 + $0xd0] sm:$0xff]   ;;  %v36_v46 = vsub.s32 0, %v35_v45  ;;  %v44_v47 = vsub.s32 2, %v35_v45  ;;  %v40_v49 = vsub.s32 1, %v35_v45 }
   0x6   :  { %v648_v13 = vld [vmem:[%s850_s3 + $0xc0] sm:$0xff]   ;;  %v652_v17 = vld [vmem:[%s850_s3 + $0xc8] sm:$0xff]   ;;  %v657_v22 = vld [vmem:[%s850_s3 + $0x10] sm:$0xff]   ;;  %v48_v50 = vsub.s32 3, %v35_v45 }
   0x7   :  { %101 = vmatpush1.bf16.msra.mxu0 %v645_v7  ;;  %144 = vmatpush1.bf16.msra.mxu1 %v646_v8  ;;  %v649_v14 = vld [vmem:[%s850_s3] sm:$0xff]   ;;  %v653_v18 = vld [vmem:[%s850_s3 + $0x8] sm:$0xff]   ;;  %v658_v23 = vld [vmem:[%s850_s3 + $0x90] sm:$0xff]  }
   0x8   :  { %590 = vmatprep.subr.bf16.mxu0 %v647_v11  ;;  %612 = vmatprep.subr.bf16.mxu1 %v648_v13  ;;  %v650_v15 = vld [vmem:[%s850_s3 + $0x80] sm:$0xff]   ;;  %v654_v19 = vld [vmem:[%s850_s3 + $0x88] sm:$0xff]   ;;  %v659_v24 = vld [vmem:[%s850_s3 + $0x58] sm:$0xff]  }
   0x9   :  { %v660_v25 = vld [vmem:[%s850_s3 + $0xd8] sm:$0xff]   ;;  %v663_v28 = vld [vmem:[%s850_s3 + $0x60] sm:$0xff]   ;;  %v667_v32 = vld [vmem:[%s850_s3 + $0x68] sm:$0xff]  }
   0xa   :  { %555 = vmatmul.mubr.msk.bf16.vlgmr.msra.gmra.mrb[0].mxu0 %vm94_vm0, %v23_v12  ;;  %556 = vmatmul.mubr.msk.bf16.vlgmr.msra.gmra.mrb[0].mxu1 %vm94_vm0, %v23_v12  ;;  %v661_v26 = vld [vmem:[%s850_s3 + $0x18] sm:$0xff]   ;;  %v664_v29 = vld [vmem:[%s850_s3 + $0xe0] sm:$0xff]   ;;  %v668_v33 = vld [vmem:[%s850_s3 + $0xe8] sm:$0xff]  }
   0xb   :  { %591 = vmatpush3.bf16.msra.mxu0 %v649_v14  ;;  %613 = vmatpush3.bf16.msra.mxu1 %v650_v15  ;;  %v662_v27 = vld [vmem:[%s850_s3 + $0x98] sm:$0xff]   ;;  %v665_v30 = vld [vmem:[%s850_s3 + $0x20] sm:$0xff]   ;;  %v669_v34 = vld [vmem:[%s850_s3 + $0x28] sm:$0xff]  }
   0xc   :  { %592 = vmatprep.subr.bf16.mxu0 %v651_v16  ;;  %614 = vmatprep.subr.bf16.mxu1 %v652_v17  ;;  %v666_v31 = vld [vmem:[%s850_s3 + $0xa0] sm:$0xff]   ;;  %v670_v35 = vld [vmem:[%s850_s3 + $0xa8] sm:$0xff]   ;;  %v671_v36 = vld [vmem:[%s850_s3 + $0x70] sm:$0xff]  }
   0xd   :  { %v672_v37 = vld [vmem:[%s850_s3 + $0xf0] sm:$0xff]   ;;  %v675_v40 = vld [vmem:[%s850_s3 + $0x78] sm:$0xff]   ;;  %v32_v48 = vld [vmem:[%s851_s2] sm:$0xf] }
   0xe   :  { %v673_v38 = vld [vmem:[%s850_s3 + $0x30] sm:$0xff]   ;;  %v676_v41 = vld [vmem:[%s850_s3 + $0xf8] sm:$0xff]   ;;  %v37_v51 = vrot.slane %v32_v48, %v36_v46  ;;  %v45_v52 = vrot.slane %v32_v48, %v44_v47  ;;  %v41_v53 = vrot.slane %v32_v48, %v40_v49  ;;  %v49_v54 = vrot.slane %v32_v48, %v48_v50 }
   0xf   :  { %593 = vmatpush3.bf16.msra.mxu0 %v653_v18  ;;  %615 = vmatpush3.bf16.msra.mxu1 %v654_v19  ;;  %v674_v39 = vld [vmem:[%s850_s3 + $0xb0] sm:$0xff]   ;;  %v677_v42 = vld [vmem:[%s850_s3 + $0x38] sm:$0xff]  }
  0x10   :  { %594 = vmatprep.subr.bf16.mxu0 %v655_v20  ;;  %616 = vmatprep.subr.bf16.mxu1 %v656_v21  ;;  %v678_v43 = vld [vmem:[%s850_s3 + $0xb8] sm:$0xff]   ;;  %v557_v21 = vld [vmem:[%s852_s4] ss:$0 sm:$0xff] }
  0x13   :  { %595 = vmatpush3.bf16.msra.mxu0 %v657_v22  ;;  %617 = vmatpush3.bf16.msra.mxu1 %v658_v23 }
  0x14   :  { %596 = vmatprep.subr.bf16.mxu0 %v659_v24  ;;  %618 = vmatprep.subr.bf16.mxu1 %v660_v25 }
  0x17   :  { %597 = vmatpush3.bf16.msra.mxu0 %v661_v26  ;;  %619 = vmatpush3.bf16.msra.mxu1 %v662_v27 }
  0x18   :  { %598 = vmatprep.subr.bf16.mxu0 %v663_v28  ;;  %620 = vmatprep.subr.bf16.mxu1 %v664_v29 }
  0x1b   :  { %599 = vmatpush3.bf16.msra.mxu0 %v665_v30  ;;  %621 = vmatpush3.bf16.msra.mxu1 %v666_v31 }
  0x1c   :  { %600 = vmatprep.subr.bf16.mxu0 %v667_v32  ;;  %622 = vmatprep.subr.bf16.mxu1 %v668_v33 }
  0x1f   :  { %601 = vmatpush3.bf16.msra.mxu0 %v669_v34  ;;  %623 = vmatpush3.bf16.msra.mxu1 %v670_v35 }
  0x20   :  { %602 = vmatprep.subr.bf16.mxu0 %v671_v36  ;;  %624 = vmatprep.subr.bf16.mxu1 %v672_v37 }
  0x23   :  { %603 = vmatpush3.bf16.msra.mxu0 %v673_v38  ;;  %625 = vmatpush3.bf16.msra.mxu1 %v674_v39 }
  0x24   :  { %604 = vmatprep.subr.bf16.mxu0 %v675_v40  ;;  %626 = vmatprep.subr.bf16.mxu1 %v676_v41 }
  0x27   :  { %605 = vmatpush3.bf16.msra.mxu0 %v677_v42  ;;  %627 = vmatpush3.bf16.msra.mxu1 %v678_v43 }
  0xdd   :  { %v132_v55 = vpop.f32.mrb[0].mxu0  ;;  %v175_v56 = vpop.f32.mrb[0].mxu1 }
  0xde   :  { %v133_v57 = vadd.f32 %v132_v55, %v37_v51  ;;  %v176_v58 = vadd.f32 %v175_v56, %v45_v52  ;;  %v134_v59 = vpop.f32.mrb[1].mxu0  ;;  %v177_v60 = vpop.f32.mrb[1].mxu1 }
  0xdf   :  { %v135_v61 = vadd.f32 %v134_v59, %v41_v53  ;;  %v178_v62 = vadd.f32 %v177_v60, %v49_v54  ;;  %v136_v63 = vpop.f32.mrb[2].mxu0  ;;  %v179_v0 = vpop.f32.mrb[2].mxu1 }
  0xe0   :  { %v186_v1 = vmax.f32 %v176_v58, 0.0  ;;  %v137_v2 = vadd.f32 %v136_v63, %v37_v51  ;;  %v180_v3 = vadd.f32 %v179_v0, %v45_v52  ;;  %v138_v4 = vpop.f32.mrb[3].mxu0  ;;  %v181_v5 = vpop.f32.mrb[3].mxu1  ;;  %v184_v9 = vmax.f32 %v133_v57, 0.0 }
  0xe1   :  { %v187_v6 = vmax.f32 %v178_v62, 0.0  ;;  %v139_v7 = vadd.f32 %v138_v4, %v41_v53  ;;  %v182_v8 = vadd.f32 %v181_v5, %v49_v54  ;;  %v185_v12 = vmax.f32 %v135_v61, 0.0 }
  0xe2   :  { %v188_v10 = vmax.f32 %v137_v2, 0.0  ;;  %v190_v11 = vmax.f32 %v180_v3, 0.0 }
  0xe3   :  { %v189_v13 = vmax.f32 %v139_v7, 0.0  ;;  %v191_v14 = vmax.f32 %v182_v8, 0.0 }
  0xe4   :  { %v192_v15 = vpack.c.bf16 %v188_v10, %v184_v9  ;;  %v194_v16 = vpack.c.bf16 %v190_v11, %v186_v1 }
  0xe5   :  { %v193_v17 = vpack.c.bf16 %v189_v13, %v185_v12  ;;  %v195_v18 = vpack.c.bf16 %v191_v14, %v187_v6 }
  0xe7   :  { %491 = vmatprep.mubr.bf16.mxu0 %v193_v17  ;;  %532 = vmatprep.mubr.bf16.mxu1 %v195_v18 }
  0xe8   :  { %492 = vmatmul.mubr.bf16.vlgmr.msra.gmra.mrb[4].mxu0 %v192_v15  ;;  %533 = vmatmul.mubr.bf16.vlgmr.msra.gmra.mrb[4].mxu1 %v194_v16 }
 0x1bb   :  { %v606_v19 = vpop.f32.mrb[4].mxu0  ;;  %v628_v20 = vpop.f32.mrb[4].mxu1 }
 0x1bc   :  { %v607_v22 = vpop.f32.mrb[5].mxu0  ;;  %v629_v23 = vpop.f32.mrb[5].mxu1 }
 0x1bd   :  { %v608_v24 = vadd.f32 %v607_v22, %v606_v19  ;;  %v630_v25 = vadd.f32 %v629_v23, %v628_v20  ;;  %v609_v26 = vpop.f32.mrb[6].mxu0  ;;  %v631_v27 = vpop.f32.mrb[6].mxu1 }
 0x1be   :  { %v610_v28 = vpop.f32.mrb[7].mxu0  ;;  %v632_v29 = vpop.f32.mrb[7].mxu1 }
 0x1bf   :  { %v494_v30 = vadd.f32 %v608_v24, %v557_v21  ;;  %v611_v31 = vadd.f32 %v610_v28, %v609_v26  ;;  %v633_v32 = vadd.f32 %v632_v29, %v631_v27 }
 0x1c1   :  { %v535_v33 = vadd.f32 %v630_v25, %v494_v30  ;;  %v497_v34 = vadd.f32 %v611_v31, %v557_v21 }
 0x1c3   :  { %541 = vst [vmem:[%s853_s5] sm:$0xff] %v535_v33  ;;  %v538_v35 = vadd.f32 %v633_v32, %v497_v34 }
 0x1c5   :  { %542 = vst [vmem:[%s853_s5 + $0x8] sm:$0xff] %v538_v35 }

</bundles_post_ra>
